<compile_context>
chip_gen: v7x
topology: tpu7x:2x2x1
jax: 0.10.0
libtpu: 0.0.40
codegen_flags: <defaults>
</compile_context>

<pallas_src>
import functools

import jax
import jax.numpy as jnp
import numpy as np
from jax import lax
from jax.experimental import pallas as pl
from jax.experimental.pallas import tpu as pltpu


# ----------------------------------------------------------------------------
# Small helpers
# ----------------------------------------------------------------------------
def _round_up(x, m):
    return ((x + m - 1) // m) * m


def _pad_to(a, shape):
    pads = [(0, s - d) for s, d in zip(shape, a.shape)]
    return jnp.pad(a, pads)


def _fold_bn(gamma, beta, mean, var, eps=1e-5):
    scale = (gamma / jnp.sqrt(var + eps)).astype(jnp.float32)
    bias = (beta - mean * scale).astype(jnp.float32)
    return scale, bias


@functools.lru_cache(maxsize=1)
def _roll_is_np_convention():
    """True if pltpu.roll(x, 1, axis=-1)[..., p] == x[..., p-1] (np.roll)."""
    def k(x_ref, o_ref):
        o_ref[...] = pltpu.roll(x_ref[...], 1, axis=1)

    x = jnp.broadcast_to(jnp.arange(128, dtype=jnp.float32), (8, 128))
    out = pl.pallas_call(
        k, out_shape=jax.ShapeDtypeStruct((8, 128), jnp.float32))(x)
    return bool(np.asarray(out)[0, 1] == 0.0)


def _vmem_limit_bytes():
    mib = 1024 * 1024
    try:
        info = pltpu.get_tpu_info()
        cap = int(getattr(info, "vmem_capacity_bytes", 128 * mib))
    except Exception:
        cap = 64 * mib  # conservative default (v7x)
    # ~100 MiB on 128-MiB chips (v5e/v6e), ~48 MiB on 64-MiB chips (v7x).
    return int(min(100 * mib, max(32 * mib, cap - 16 * mib)))


# ----------------------------------------------------------------------------
# Kernel
# ----------------------------------------------------------------------------
def _bottleneck_kernel(x_ref, mask_ref,
                       w1_ref, s1_ref, b1_ref,
                       w2_ref, s2_ref, b2_ref,
                       w3_ref, s3_ref, b3_ref,
                       o_ref, *, shifts, compute_dtype):
    """One batch element, channel-major.
       x_ref:   (Cinp, HWp)   activation slab (compute_dtype)
       mask_ref:(9, HWp)      border-mask multipliers, tap t = (dy+1)*3+(dx+1)
       w1_ref:  (Cmidp, Cinp) w2_ref: (9, Cmidp, Cmidp)  w3_ref: (Coutp, Cmidp)
       s*/b*:   (C, 1)        folded BN scale/bias (f32)
       o_ref:   (Coutp, HWp)"""
    cdt = compute_dtype
    f32 = jnp.float32

    x = x_ref[...]

    # ---- conv1 (1x1) + bn1 + relu -----------------------------------------
    h1 = jnp.dot(w1_ref[...], x, preferred_element_type=f32)
    h1 = jnp.maximum(h1 * s1_ref[...] + b1_ref[...], 0.0)       # f32
    h1c = h1.astype(cdt)                                        # taps in cdt

    # ---- conv2 (3x3, stride=1, pad=1): 9 accumulating tap matmuls ----------
    acc = None
    for t in range(9):
        shift = shifts[t]
        tap = pltpu.roll(h1c, shift, axis=1) if shift else h1c
        if t != 4:                       # center tap needs no border mask
            tap = tap * mask_ref[pl.ds(t, 1), :]
        part = jnp.dot(w2_ref[t], tap, preferred_element_type=f32)
        acc = part if acc is None else acc + part
    h2 = jnp.maximum(acc * s2_ref[...] + b2_ref[...], 0.0)      # f32

    # ---- conv3 (1x1) + bn3 + identity residual + relu ----------------------
    h3 = jnp.dot(w3_ref[...], h2.astype(cdt), preferred_element_type=f32)
    h3 = h3 * s3_ref[...] + b3_ref[...]
    out = jnp.maximum(h3 + x.astype(f32), 0.0)
    o_ref[...] = out.astype(o_ref.dtype)


# ----------------------------------------------------------------------------
# Wrapper
# ----------------------------------------------------------------------------
def bottleneck_forward(x_nchw, params, *, compute_dtype=jnp.bfloat16,
                       out_dtype=jnp.float32):
    """x_nchw: (B, Cin, H, W) float32 (PyTorch layout). Returns (B, Cout, H, W).

    compute_dtype: dtype of matmul operands AND of the DMA'd activation tile
    (bf16 recommended on all generations for MXU throughput / halved bytes);
    accumulation and all elementwise BN/ReLU/residual math stay float32.
    out_dtype: dtype of the HBM output (use bf16 if the consumer accepts it).
    """
    (w1, bn1, w2, bn2, w3, bn3) = params
    B, Cin, H, W = x_nchw.shape
    Cmid = w1.shape[0]
    Cout = w3.shape[0]
    assert Cout == Cin, "identity residual requires inplanes == planes*4"
    HW = H * W

    cdt = jnp.dtype(compute_dtype)
    sub = 16 if cdt == jnp.dtype(jnp.bfloat16) else 8
    Cinp = _round_up(Cin, sub)
    Coutp = Cinp
    Cmidp = _round_up(Cmid, sub)
    HWp = _round_up(HW, 128)

    s1, b1 = _fold_bn(*bn1)
    s2, b2 = _fold_bn(*bn2)
    s3, b3 = _fold_bn(*bn3)

    # Channel-major slab: NCHW -> (B, C, H*W) is a free reshape; zero-pad
    # channels to a sublane multiple and H*W to a 128-lane multiple, and DMA
    # the activation in compute_dtype.
    x3 = _pad_to(x_nchw.reshape(B, Cin, HW), (B, Cinp, HWp)).astype(cdt)

    w1k = _pad_to(w1, (Cmidp, Cinp)).astype(cdt)                    # (Cmidp, Cinp)
    # OIHW -> (ky, kx, O, I) -> (9, O, I); tap t = ky*3 + kx
    w2t = jnp.transpose(w2, (2, 3, 0, 1)).reshape(9, Cmid, Cmid)
    w2k = _pad_to(w2t, (9, Cmidp, Cmidp)).astype(cdt)
    w3k = _pad_to(w3, (Coutp, Cmidp)).astype(cdt)                   # (Coutp, Cmidp)

    s1p = _pad_to(s1[:, None], (Cmidp, 1)); b1p = _pad_to(b1[:, None], (Cmidp, 1))
    s2p = _pad_to(s2[:, None], (Cmidp, 1)); b2p = _pad_to(b2[:, None], (Cmidp, 1))
    s3p = _pad_to(s3[:, None], (Coutp, 1)); b3p = _pad_to(b3[:, None], (Coutp, 1))

    # Precomputed border masks (depend only on H, W): 1.0 where the shifted
    # tap is in-bounds, 0.0 at image borders / padded lanes.
    lane = np.arange(HWp)
    row, col, inb = lane // W, lane % W, lane < HW
    masks = []
    for dy in (-1, 0, 1):
        for dx in (-1, 0, 1):
            ok = (inb & (row + dy >= 0) & (row + dy < H)
                  & (col + dx >= 0) & (col + dx < W))
            masks.append(ok.astype(np.float32))
    mask9 = jnp.asarray(np.stack(masks)).astype(cdt)                # (9, HWp)

    # Static lane-rotation amounts so that rolled[:, p] == h1[:, p + dy*W + dx].
    np_conv = _roll_is_np_convention()
    def _shift(d):
        return (-d) % HWp if np_conv else d % HWp
    shifts = tuple(_shift(dy * W + dx) for dy in (-1, 0, 1) for dx in (-1, 0, 1))

    kernel = functools.partial(_bottleneck_kernel, shifts=shifts, compute_dtype=cdt)

    itemsize = cdt.itemsize
    flops = int(2 * B * HWp * (Cinp * Cmidp + 9 * Cmidp * Cmidp + Cmidp * Coutp))
    bytes_accessed = int(
        x3.size * itemsize + B * Coutp * HWp * jnp.dtype(out_dtype).itemsize
        + (w1k.size + w2k.size + w3k.size + mask9.size) * itemsize
        + (4 * Cmidp + 2 * Coutp) * 4)

    def _run(single_buffer_weights):
        pin_kw = ({"pipeline_mode": pl.Buffered(1)}
                  if single_buffer_weights else {})

        def pinned(shape):
            zeros = (0,) * len(shape)
            return pl.BlockSpec(shape, lambda b: zeros, **pin_kw)

        return pl.pallas_call(
            kernel,
            out_shape=jax.ShapeDtypeStruct((B, Coutp, HWp), out_dtype),
            grid=(B,),
            in_specs=[
                pl.BlockSpec((None, Cinp, HWp), lambda b: (b, 0, 0)),  # activation
                pinned((9, HWp)),                                      # border masks
                pinned((Cmidp, Cinp)),                                 # w1
                pinned((Cmidp, 1)), pinned((Cmidp, 1)),                # bn1 s/b
                pinned((9, Cmidp, Cmidp)),                             # w2 taps
                pinned((Cmidp, 1)), pinned((Cmidp, 1)),                # bn2 s/b
                pinned((Coutp, Cmidp)),                                # w3
                pinned((Coutp, 1)), pinned((Coutp, 1)),                # bn3 s/b
            ],
            out_specs=pl.BlockSpec((None, Coutp, HWp), lambda b: (b, 0, 0)),
            compiler_params=pltpu.CompilerParams(
                dimension_semantics=("parallel",),        # batch across TCs (v7x)
                vmem_limit_bytes=_vmem_limit_bytes()),
            cost_estimate=pl.CostEstimate(flops=flops, transcendentals=0,
                                          bytes_accessed=bytes_accessed),
        )(x3, mask9, w1k, s1p, b1p, w2k, s2p, b2p, w3k, s3p, b3p)

    try:
        out3 = _run(True)       # single-buffer the pinned (constant) inputs
    except Exception:
        out3 = _run(False)      # fall back to default double-buffering

    return out3[:, :Cout, :HW].reshape(B, Cout, H, W)


# ----------------------------------------------------------------------------
# Pure-JAX reference (eval-mode BN), NCHW in/out, HIGHEST precision.
# ----------------------------------------------------------------------------
def _reference_nchw(x, params):
    (w1, bn1, w2, bn2, w3, bn3) = params
    hi = lax.Precision.HIGHEST

    def bn(h, p):
        gamma, beta, mean, var = p
        s = gamma / jnp.sqrt(var + 1e-5)
        b = beta - mean * s
        return h * s[None, :, None, None] + b[None, :, None, None]

    h = jnp.einsum('bchw,dc->bdhw', x, w1, precision=hi)
    h = jax.nn.relu(bn(h, bn1))
    h = lax.conv_general_dilated(h, w2, window_strides=(1, 1),
                                 padding=[(1, 1), (1, 1)],
                                 dimension_numbers=('NCHW', 'OIHW', 'NCHW'),
                                 precision=hi)
    h = jax.nn.relu(bn(h, bn2))
    h = jnp.einsum('bchw,dc->bdhw', h, w3, precision=hi)
    h = bn(h, bn3)
    return jax.nn.relu(h + x)


def _make_params(key, inplanes, planes):
    ks = jax.random.split(key, 6)
    cmid, cout = planes, planes * 4

    def bn_params(k, c):
        k1, k2, k3 = jax.random.split(k, 3)
        gamma = 1.0 + 0.1 * jax.random.normal(k1, (c,), jnp.float32)
        beta = 0.1 * jax.random.normal(k2, (c,), jnp.float32)
        mean = 0.1 * jax.random.normal(k3, (c,), jnp.float32)
        var = jnp.ones((c,), jnp.float32) * 0.9
        return (gamma, beta, mean, var)

    w1 = 0.1 * jax.random.normal(ks[0], (cmid, inplanes), jnp.float32)    # conv1 (O, I)
    w2 = 0.1 * jax.random.normal(ks[1], (cmid, cmid, 3, 3), jnp.float32)  # conv2 OIHW
    w3 = 0.1 * jax.random.normal(ks[2], (cout, cmid), jnp.float32)        # conv3 (O, I)
    return (w1, bn_params(ks[3], cmid), w2, bn_params(ks[4], cmid),
            w3, bn_params(ks[5], cout))


if __name__ == "__main__":
    # Bottleneck(inplanes=16, planes=4, stride=1, dilation=1, downsample=None)
    B, inplanes, planes, H, W = 2, 16, 4, 16, 16
    key = jax.random.PRNGKey(0)
    kx, kp = jax.random.split(key)
    x = jax.random.normal(kx, (B, inplanes, H, W), jnp.float32)   # NCHW input
    params = _make_params(kp, inplanes, planes)

    ref = jax.block_until_ready(_reference_nchw(x, params))

    # f32-compute path: tight tolerance vs HIGHEST-precision reference.
    out_f32 = jax.block_until_ready(
        bottleneck_forward(x, params, compute_dtype=jnp.float32))
    np.testing.assert_allclose(np.asarray(out_f32), np.asarray(ref),
                               rtol=2e-3, atol=2e-3)

    # bf16-compute path (bf16 matmuls + bf16 activation DMA): looser tolerance.
    out_bf16 = jax.block_until_ready(
        bottleneck_forward(x, params, compute_dtype=jnp.bfloat16))
    np.testing.assert_allclose(np.asarray(out_bf16), np.asarray(ref),
                               rtol=5e-2, atol=5e-2)

    print("KERNEL_OK")
</pallas_src>

<mosaic_0001>
module attributes {stable_mosaic.version = 11 : i64} {
  func.func @k(%arg0: memref<8x128xf32, #tpu.memory_space<vmem>>, %arg1: memref<8x128xf32, #tpu.memory_space<vmem>>) attributes {dimension_semantics = [], scalar_prefetch = 0 : i64, scratch_operands = 0 : i64, tpu.core_type = #tpu.core_type<tc>} {
    %c0 = arith.constant 0 : index
    %c0_0 = arith.constant 0 : index
    %0 = vector.load %arg0[%c0, %c0_0] : memref<8x128xf32, #tpu.memory_space<vmem>>, vector<8x128xf32>
    %c1_i32 = arith.constant 1 : i32
    %1 = tpu.dynamic_rotate %0 by %c1_i32 dim 1 : vector<8x128xf32>, i32 -> vector<8x128xf32>
    %c0_1 = arith.constant 0 : index
    %c0_2 = arith.constant 0 : index
    %2 = vector.load %arg1[%c0_1, %c0_2] : memref<8x128xf32, #tpu.memory_space<vmem>>, vector<8x128xf32>
    tpu.vector_store %arg1[%c0_1, %c0_2], %1 {strides = array<i32>} : memref<8x128xf32, #tpu.memory_space<vmem>>, vector<8x128xf32>,
    return
  }
}

</mosaic_0001>

<bundles_post_ra>
// kernel: tpu_custom_call.1
= control target key start
LH: loop header
LB: loop body
LE: loop exit
PB: predicated region body
PF: predicated region fallthrough
CT: control target
= control target key end

     0   :  { %6 = vsyncpa [#allocation3], 0  ;;  %s128_s0 = inlined_call_operand.hbm [shape: f32[8,128], index: 0, kind: input, shape index: {}]   ;;  %s129_s1 = inlined_call_operand.hbm [shape: f32[8,128], index: 1, kind: output, shape index: {}]  }
   0x1   :  { %7 = vsyncpa [#allocation4], 0  ;;  %s91_s6 = smov [#allocation2]   ;;  %s43_s10 = scalar_lea.hbm %s128_s0, 128 }
   0x2   :  { %s14_s7 = sshll.u32 %s91_s6, 4  ;;  %p44_p0 = scmp.ne.s32.totalorder %s128_s0, %s43_s10  ;;  %s15_s7 = int_to_ptr.vmem [resolvable:$true] %s14_s7 }
   0x3   :  { %p47_p1 = scmp.lt.u32.totalorder %s43_s10, %s128_s0 }
   0x5   :  { %p49_p2 = pnand %p47_p1, %p44_p0 }
   0x7   :  { %52 = shalt.err (!%p49_p2)
}
   0x8   :  { %s53_s15 = scalar_lea.vmem %s15_s7, 128  ;;  %p58_p4 = scmp.lt.s32.totalorder %s15_s7, %s15_s7 }
   0x9   :  { %p54_p3 = scmp.ne.s32.totalorder %s15_s7, %s53_s15  ;;  %p59_p5 = scmp.lt.s32.totalorder %s53_s15, %s53_s15 }
   0xb   :  { %p60_p6 = por %p59_p5, %p58_p4 }
   0xd   :  { %p61_p7 = pnand %p60_p6, %p54_p3 }
   0xf   :  { %64 = shalt.err (!%p61_p7)
}
  0x10   :  { %17 = dma.hbm_to_vmem [thread:$0]  %s128_s0, 128, %s15_s7, [#allocation3]  }
  0x11   :  { %87 = dma.done.wait [#allocation3], 128  }
  0x12   :  { %88 = vsyncadd [#allocation3], 4294967168  ;;  %v21_v0 = vld [vmem:[#allocation2] sm:$0xff]  ;;  %s92_s18 = smov 1   ;;  %s93_s19 = smov [#allocation5]  }
  0x13   :  { %22 = vrot.lane.b32.xlu0 %v21_v0, %s92_s18  ;;  %s31_s20 = sshll.u32 %s93_s19, 4  ;;  %s32_s20 = int_to_ptr.vmem [resolvable:$true] %s31_s20 }
  0x14   :  { %s65_s21 = scalar_lea.vmem %s32_s20, 128  ;;  %p70_p9 = scmp.lt.s32.totalorder %s32_s20, %s32_s20 }
  0x15   :  { %p66_p8 = scmp.ne.s32.totalorder %s32_s20, %s65_s21  ;;  %p71_p10 = scmp.lt.s32.totalorder %s65_s21, %s65_s21 }
  0x17   :  { %p72_p11 = por %p71_p10, %p70_p9 }
  0x19   :  { %p73_p12 = pnand %p72_p11, %p66_p8 }
  0x85   :  { %v23_v1 = vpop.permute.xlu0 %22 }
  0x86   :  { %24 = vst [vmem:[#allocation5] sm:$0xff] %v23_v1 }
  0x87   :  { %76 = shalt.err (!%p73_p12)
}
  0x88   :  { %s77_s0 = scalar_lea.hbm %s129_s1, 128 }
  0x89   :  { %p78_p13 = scmp.ne.s32.totalorder %s129_s1, %s77_s0  ;;  %p81_p0 = scmp.lt.u32.totalorder %s77_s0, %s129_s1 }
  0x8b   :  { %p83_p1 = pnand %p81_p0, %p78_p13 }
  0x8d   :  { %86 = shalt.err (!%p83_p1)
}
  0x8e   :  { %34 = dma.vmem_to_hbm [thread:$0]  %s32_s20, 128, %s129_s1, [#allocation4]  }
  0x8f   :  { %89 = dma.done.wait [#allocation4], 128  }
  0x90   :  { %90 = vsyncadd [#allocation4], 4294967168 }
  0x91   :  { %38 = vsyncpa [#allocation3], 1 }
  0x92   :  { %39 = vsyncpa [#allocation4], 1 }

</bundles_post_ra>
